<compile_context>
chip_gen: v7x
topology: tpu7x:2x2x1
jax: 0.10.0
libtpu: 0.0.40
codegen_flags: <defaults>
</compile_context>

<pallas_src>
import jax
import jax.numpy as jnp
from jax import lax
from jax.experimental import pallas as pl
from jax.experimental.pallas import tpu as pltpu


def _padded_bytes(shape, dtype):
    """VMEM bytes of `shape` after (sublane, lane) tile padding."""
    itemsize = jnp.dtype(dtype).itemsize
    sub = {4: 8, 2: 16, 1: 32}.get(itemsize, 8)
    dims = list(shape)
    if len(dims) >= 2:
        dims[-1] = -(-dims[-1] // 128) * 128
        dims[-2] = -(-dims[-2] // sub) * sub
    elif dims:
        dims[-1] = -(-dims[-1] // 128) * 128
    n = 1
    for d in dims:
        n *= d
    return n * itemsize


def _make_kernel(C, C8P, tq, ret_attention, compute_dtype):
    def kernel(x_ref, w_ref, b_ref, gamma_ref, *refs):
        if ret_attention:
            out_ref, attn_ref, q_sc, k_sc, v_sc = refs
        else:
            out_ref, q_sc, k_sc, v_sc = refs
            attn_ref = None

        qt = pl.program_id(1)

        # --- Fused Q/K/V projection for the whole batch slab: a single MXU
        #     matmul + bias broadcast, computed only on the first query tile
        #     and cached in VMEM scratch (Q in f32, K/V in compute dtype).
        @pl.when(qt == 0)
        def _():
            qkv = jnp.dot(w_ref[...], x_ref[0],
                          preferred_element_type=jnp.float32)       # (2*C8P+C, N)
            qkv = qkv + b_ref[...]                                   # bias fold
            q_sc[...] = qkv[:C8P, :]
            k_sc[...] = qkv[C8P:2 * C8P, :].astype(k_sc.dtype)
            v_sc[...] = qkv[2 * C8P:, :].astype(v_sc.dtype)

        q_start = pl.multiple_of(qt * tq, tq)

        # --- Query tile: small (C8P, TQ) f32 slice + transpose (XLU, cheap),
        #     then bf16 for the MXU.
        q_tile = q_sc[:, pl.ds(q_start, tq)]                         # (C8P, TQ)
        q_t = jnp.transpose(q_tile).astype(compute_dtype)            # (TQ, C8P)

        # --- energy[i, j] = <q_i, k_j>  (bf16 operands, f32 accumulation)
        energy = jnp.dot(q_t, k_sc[...],
                         preferred_element_type=jnp.float32)         # (TQ, N)

        # --- numerically stable row softmax; reciprocal on the EUP slot.
        m = jnp.max(energy, axis=-1, keepdims=True)
        e = jnp.exp(energy - m)
        attn = e * pl.reciprocal(jnp.sum(e, axis=-1, keepdims=True),
                                 approx=True)                        # (TQ, N)

        # --- out_tile = V @ attn^T  -> (C, TQ).  Transposed-RHS contraction:
        #     the MXU consumes attn directly; no N x N transpose materialized.
        pv = lax.dot_general(v_sc[...], attn.astype(compute_dtype),
                             dimension_numbers=(((1,), (1,)), ((), ())),
                             preferred_element_type=jnp.float32)     # (C, TQ)

        x_res = x_ref[0, :, pl.ds(q_start, tq)]                      # (C, TQ)
        gamma = gamma_ref[0, 0]
        out_ref[0] = (gamma * pv + x_res).astype(out_ref.dtype)

        if ret_attention:
            attn_ref[0] = attn.astype(attn_ref.dtype)

    return kernel


def self_attn_layer_v2(x_nchw, wq, bq, wk, bk, wv, bv, gamma, *,
                       ret_attention=True, tq=None,
                       compute_dtype=jnp.bfloat16,
                       attn_dtype=jnp.float32):
    """Pallas implementation of SelfAttnLayerV2.forward.

    Args:
      x_nchw: (B, C, W, H) float32
      wq, wk: (C//8, C)   (squeezed 1x1 conv kernels), bq, bk: (C//8,)
      wv:     (C, C), bv: (C,)
      gamma:  scalar, shape (1,)
    Returns:
      out (B, C, W, H)                      if ret_attention=False
      (out, attention (B, N, N))            if ret_attention=True
    """
    B, C, W, H = x_nchw.shape
    N = W * H
    C8 = wq.shape[0]
    # Pad the q/k head dim to a full bf16 sublane tile so the energy
    # contraction and K scratch are tile-aligned (padded rows are zero).
    C8P = max(16, -(-C8 // 16) * 16)
    R = 2 * C8P + C                    # stacked [Wq ; Wk ; Wv] output rows

    if tq is None:                     # query tile (multiple of 128 when possible)
        tq = N
        for cand in (1024, 512, 256, 128):
            if N % cand == 0 and cand * N * 4 * 8 <= 48 * 2**20:
                tq = cand
                break
    assert N % tq == 0, "query tile must divide W*H"
    nq = N // tq

    f32 = jnp.float32
    x = x_nchw.reshape(B, C, N).astype(f32)

    def pad_rows(w, b, rows):
        out_dim = w.shape[0]
        wp = jnp.zeros((rows, C), f32).at[:out_dim].set(w.astype(f32))
        bp = jnp.zeros((rows,), f32).at[:out_dim].set(b.astype(f32))
        return wp, bp

    wq_p, bq_p = pad_rows(wq, bq, C8P)
    wk_p, bk_p = pad_rows(wk, bk, C8P)
    w_qkv = jnp.concatenate([wq_p, wk_p, wv.astype(f32)], axis=0)          # (R, C)
    b_qkv = jnp.concatenate([bq_p, bk_p, bv.astype(f32)], axis=0)[:, None]  # (R, 1)
    g2 = jnp.reshape(gamma, (1, 1)).astype(f32)

    in_specs = [
        pl.BlockSpec((1, C, N), lambda b, q: (b, 0, 0)),   # x slab (per batch)
        pl.BlockSpec((R, C), lambda b, q: (0, 0)),         # stacked Wq/Wk/Wv
        pl.BlockSpec((R, 1), lambda b, q: (0, 0)),         # stacked biases
        pl.BlockSpec((1, 1), lambda b, q: (0, 0)),         # gamma
    ]
    out_shape = [jax.ShapeDtypeStruct((B, C, N), f32)]
    out_specs = [pl.BlockSpec((1, C, tq), lambda b, q: (b, 0, q))]
    if ret_attention:
        out_shape.append(jax.ShapeDtypeStruct((B, N, N), attn_dtype))
        out_specs.append(pl.BlockSpec((1, tq, N), lambda b, q: (b, q, 0)))

    scratch_shapes = [pltpu.VMEM((C8P, N), f32),            # Q cache (f32)
                      pltpu.VMEM((C8P, N), compute_dtype),  # K cache
                      pltpu.VMEM((C, N), compute_dtype)]    # V cache

    # Explicit VMEM budget: double-buffered blocks + scratch + live
    # intermediates, with headroom.
    est = 2 * _padded_bytes((C, N), f32)
    est += 2 * _padded_bytes((R, C), f32) + 2 * _padded_bytes((R, 1), f32)
    est += 2 * _padded_bytes((C, tq), f32)
    if ret_attention:
        est += 2 * _padded_bytes((tq, N), attn_dtype)
    est += _padded_bytes((C8P, N), f32)
    est += _padded_bytes((C8P, N), compute_dtype) + _padded_bytes((C, N), compute_dtype)
    est += _padded_bytes((R, N), f32)            # fused projection value
    est += 4 * _padded_bytes((tq, N), f32)       # energy / exp / attn slabs
    vmem_limit = int(min(max(2 * est, 16 * 2**20), 64 * 2**20))

    kernel = _make_kernel(C, C8P, tq, ret_attention, compute_dtype)

    results = pl.pallas_call(
        kernel,
        out_shape=tuple(out_shape),
        grid_spec=pltpu.PrefetchScalarGridSpec(
            num_scalar_prefetch=0,
            grid=(B, nq),
            in_specs=in_specs,
            out_specs=out_specs,
            scratch_shapes=scratch_shapes),
        compiler_params=pltpu.CompilerParams(
            dimension_semantics=("parallel", "arbitrary"),
            vmem_limit_bytes=vmem_limit),
    )(x, w_qkv, b_qkv, g2)

    if ret_attention:
        out, attn = results
        return out.reshape(B, C, W, H), attn
    out = results[0] if isinstance(results, (tuple, list)) else results
    return out.reshape(B, C, W, H)


def _reference(x_nchw, wq, bq, wk, bk, wv, bv, gamma):
    """Pure-JAX reference reproducing the PyTorch forward exactly."""
    B, C, W, H = x_nchw.shape
    N = W * H
    x = x_nchw.reshape(B, C, N)
    q = jnp.einsum('oc,bcn->bon', wq, x) + bq[None, :, None]   # (B, C8, N)
    k = jnp.einsum('oc,bcn->bon', wk, x) + bk[None, :, None]   # (B, C8, N)
    v = jnp.einsum('oc,bcn->bon', wv, x) + bv[None, :, None]   # (B, C,  N)
    energy = jnp.einsum('bci,bcj->bij', q, k)                  # (B, N, N)
    attn = jax.nn.softmax(energy, axis=-1)
    out = jnp.einsum('bcn,bmn->bcm', v, attn)                  # (B, C, N)
    out = gamma[0] * out + x
    return out.reshape(B, C, W, H), attn


if __name__ == "__main__":
    # Small shapes consistent with the module: in_dim=C=32, spatial 16x16.
    B, C, W, H = 2, 32, 16, 16
    C8 = C // 8
    N = W * H

    key = jax.random.PRNGKey(0)
    kx, kq, kbq, kk, kbk, kv, kbv = jax.random.split(key, 7)

    x = jax.random.normal(kx, (B, C, W, H), dtype=jnp.float32)
    scale = 0.1
    wq = scale * jax.random.normal(kq, (C8, C), dtype=jnp.float32)
    bq = scale * jax.random.normal(kbq, (C8,), dtype=jnp.float32)
    wk = scale * jax.random.normal(kk, (C8, C), dtype=jnp.float32)
    bk = scale * jax.random.normal(kbk, (C8,), dtype=jnp.float32)
    wv = scale * jax.random.normal(kv, (C, C), dtype=jnp.float32)
    bv = scale * jax.random.normal(kbv, (C,), dtype=jnp.float32)
    # Module inits gamma to 0 (identity); use a nonzero value so the attention
    # path is actually exercised.
    gamma = jnp.array([0.7], dtype=jnp.float32)

    # tq=128 -> 2 query tiles per batch: exercises the per-batch Q/K/V caching
    # across the "arbitrary" query-tile grid axis.
    out, attn = self_attn_layer_v2(x, wq, bq, wk, bk, wv, bv, gamma,
                                   ret_attention=True, tq=128)
    out = jax.block_until_ready(out)
    attn = jax.block_until_ready(attn)

    out_ref, attn_ref = _reference(x, wq, bq, wk, bk, wv, bv, gamma)

    assert out.shape == (B, C, W, H)
    assert attn.shape == (B, N, N)
    # bf16 matmul operands + approximate softmax reciprocal -> relaxed tolerances.
    assert jnp.allclose(attn, attn_ref, atol=3e-3, rtol=3e-2), \
        float(jnp.max(jnp.abs(attn - attn_ref)))
    assert jnp.allclose(out, out_ref, atol=2e-2, rtol=2e-2), \
        float(jnp.max(jnp.abs(out - out_ref)))

    # ret_attention=False path: no N x N attention writeback at all.
    out_only = self_attn_layer_v2(x, wq, bq, wk, bk, wv, bv, gamma,
                                  ret_attention=False, tq=128)
    out_only = jax.block_until_ready(out_only)
    assert jnp.allclose(out_only, out, atol=1e-5, rtol=1e-5)

    # Default (auto) tile size path.
    out_auto, attn_auto = self_attn_layer_v2(x, wq, bq, wk, bk, wv, bv, gamma,
                                             ret_attention=True)
    out_auto = jax.block_until_ready(out_auto)
    assert jnp.allclose(out_auto, out_ref, atol=2e-2, rtol=2e-2)
    assert jnp.allclose(attn_auto, attn_ref, atol=3e-3, rtol=3e-2)

    print("KERNEL_OK")
</pallas_src>

<mosaic_0001>
module attributes {stable_mosaic.version = 11 : i64} {
  func.func @kernel(%arg0: i32, %arg1: i32, %arg2: memref<1x32x256xf32, #tpu.memory_space<vmem>>, %arg3: memref<64x32xf32, #tpu.memory_space<vmem>>, %arg4: memref<64x1xf32, #tpu.memory_space<vmem>>, %arg5: memref<1x1xf32, #tpu.memory_space<vmem>>, %arg6: memref<1x32x128xf32, #tpu.memory_space<vmem>>, %arg7: memref<1x128x256xf32, #tpu.memory_space<vmem>>, %arg8: memref<16x256xf32, #tpu.memory_space<vmem>>, %arg9: memref<16x256xbf16, #tpu.memory_space<vmem>>, %arg10: memref<32x256xbf16, #tpu.memory_space<vmem>>) attributes {dimension_semantics = [#tpu.dimension_semantics<parallel>, #tpu.dimension_semantics<arbitrary>], iteration_bounds = array<i64: 2, 2>, scalar_prefetch = 0 : i64, scratch_operands = 3 : i64, tpu.core_type = #tpu.core_type<tc>, window_params = [{transform_indices = @transform_0, window_bounds = array<i64: 1, 32, 256>}, {pipeline_mode = #tpu.pipeline_mode<synchronous>, transform_indices = @transform_1, window_bounds = array<i64: 64, 32>}, {pipeline_mode = #tpu.pipeline_mode<synchronous>, transform_indices = @transform_2, window_bounds = array<i64: 64, 1>}, {pipeline_mode = #tpu.pipeline_mode<synchronous>, transform_indices = @transform_3, window_bounds = array<i64: 1, 1>}, {transform_indices = @transform_4, window_bounds = array<i64: 1, 32, 128>}, {transform_indices = @transform_5, window_bounds = array<i64: 1, 128, 256>}]} {
    %c0_i32 = arith.constant 0 : i32
    %0 = arith.cmpi eq, %arg1, %c0_i32 : i32
    %1 = arith.extui %0 : i1 to i32
    %c0_i32_0 = arith.constant 0 : i32
    %2 = arith.cmpi ne, %1, %c0_i32_0 : i32
    scf.if %2 {
      %c0_18 = arith.constant 0 : index
      %c0_19 = arith.constant 0 : index
      %38 = vector.load %arg3[%c0_18, %c0_19] : memref<64x32xf32, #tpu.memory_space<vmem>>, vector<64x32xf32>
      %c0_20 = arith.constant 0 : index
      %c0_21 = arith.constant 0 : index
      %c0_22 = arith.constant 0 : index
      %39 = vector.load %arg2[%c0_20, %c0_21, %c0_22] : memref<1x32x256xf32, #tpu.memory_space<vmem>>, vector<1x32x256xf32>
      %40 = vector.shape_cast %39 : vector<1x32x256xf32> to vector<32x256xf32>
      %cst_23 = arith.constant dense<0.000000e+00> : vector<64x256xf32>
      %41 = tpu.matmul %38, %40, %cst_23 {dimension_numbers = #tpu.dot_dimension_numbers<[1], [0], [0], [1], [0, 0, 1, 1], [], []>} : vector<64x32xf32>, vector<32x256xf32>, vector<64x256xf32> -> vector<64x256xf32>
      %c0_24 = arith.constant 0 : index
      %c0_25 = arith.constant 0 : index
      %42 = vector.load %arg4[%c0_24, %c0_25] : memref<64x1xf32, #tpu.memory_space<vmem>>, vector<64x1xf32>
      %43 = vector.broadcast %42 : vector<64x1xf32> to vector<64x256xf32>
      %44 = arith.addf %41, %43 : vector<64x256xf32>
      %45 = vector.extract_strided_slice %44 {offsets = [0, 0], sizes = [16, 256], strides = [1, 1]} : vector<64x256xf32> to vector<16x256xf32>
      %c0_26 = arith.constant 0 : index
      %c0_27 = arith.constant 0 : index
      %46 = vector.load %arg8[%c0_26, %c0_27] : memref<16x256xf32, #tpu.memory_space<vmem>>, vector<16x256xf32>
      tpu.vector_store %arg8[%c0_26, %c0_27], %45 {strides = array<i32>} : memref<16x256xf32, #tpu.memory_space<vmem>>, vector<16x256xf32>,
      %47 = vector.extract_strided_slice %44 {offsets = [16, 0], sizes = [16, 256], strides = [1, 1]} : vector<64x256xf32> to vector<16x256xf32>
      %48 = arith.truncf %47 : vector<16x256xf32> to vector<16x256xbf16>
      %c0_28 = arith.constant 0 : index
      %c0_29 = arith.constant 0 : index
      %49 = vector.load %arg9[%c0_28, %c0_29] : memref<16x256xbf16, #tpu.memory_space<vmem>>, vector<16x256xbf16>
      tpu.vector_store %arg9[%c0_28, %c0_29], %48 {strides = array<i32>} : memref<16x256xbf16, #tpu.memory_space<vmem>>, vector<16x256xbf16>,
      %50 = vector.extract_strided_slice %44 {offsets = [32, 0], sizes = [32, 256], strides = [1, 1]} : vector<64x256xf32> to vector<32x256xf32>
      %51 = arith.truncf %50 : vector<32x256xf32> to vector<32x256xbf16>
      %c0_30 = arith.constant 0 : index
      %c0_31 = arith.constant 0 : index
      %52 = vector.load %arg10[%c0_30, %c0_31] : memref<32x256xbf16, #tpu.memory_space<vmem>>, vector<32x256xbf16>
      tpu.vector_store %arg10[%c0_30, %c0_31], %51 {strides = array<i32>} : memref<32x256xbf16, #tpu.memory_space<vmem>>, vector<32x256xbf16>,
    } else {
    }
    %c128_i32 = arith.constant 128 : i32
    %3 = arith.muli %arg1, %c128_i32 : i32
    %4 = tpu.assume_multiple %3, 128 : i32
    %c0 = arith.constant 0 : index
    %5 = arith.index_cast %4 : i32 to index
    %6 = vector.load %arg8[%c0, %5] : memref<16x256xf32, #tpu.memory_space<vmem>>, vector<16x128xf32>
    %7 = tpu.transpose %6, [1, 0] : vector<16x128xf32> -> vector<128x16xf32>
    %8 = arith.truncf %7 : vector<128x16xf32> to vector<128x16xbf16>
    %c0_1 = arith.constant 0 : index
    %c0_2 = arith.constant 0 : index
    %9 = vector.load %arg9[%c0_1, %c0_2] : memref<16x256xbf16, #tpu.memory_space<vmem>>, vector<16x256xbf16>
    %cst = arith.constant dense<0.000000e+00> : vector<128x256xf32>
    %10 = tpu.matmul %8, %9, %cst {dimension_numbers = #tpu.dot_dimension_numbers<[1], [0], [0], [1], [0, 0, 1, 1], [], []>} : vector<128x16xbf16>, vector<16x256xbf16>, vector<128x256xf32> -> vector<128x256xf32>
    %cst_3 = arith.constant dense<0xFF800000> : vector<128xf32>
    %11 = vector.multi_reduction <maximumf>, %10, %cst_3 [1] : vector<128x256xf32> to vector<128xf32>
    %12 = vector.shape_cast %11 : vector<128xf32> to vector<128x1xf32>
    %13 = vector.broadcast %12 : vector<128x1xf32> to vector<128x256xf32>
    %14 = arith.subf %10, %13 : vector<128x256xf32>
    %15 = math.exp %14 : vector<128x256xf32>
    %cst_4 = arith.constant dense<0.000000e+00> : vector<128xf32>
    %16 = vector.multi_reduction <add>, %15, %cst_4 [1] : vector<128x256xf32> to vector<128xf32>
    %17 = vector.shape_cast %16 : vector<128xf32> to vector<128x1xf32>
    %18 = tpu.reciprocal %17 {approx = true} : vector<128x1xf32> -> vector<128x1xf32>
    %19 = vector.broadcast %18 : vector<128x1xf32> to vector<128x256xf32>
    %20 = arith.mulf %15, %19 : vector<128x256xf32>
    %c0_5 = arith.constant 0 : index
    %c0_6 = arith.constant 0 : index
    %21 = vector.load %arg10[%c0_5, %c0_6] : memref<32x256xbf16, #tpu.memory_space<vmem>>, vector<32x256xbf16>
    %22 = arith.truncf %20 : vector<128x256xf32> to vector<128x256xbf16>
    %cst_7 = arith.constant dense<0.000000e+00> : vector<32x128xf32>
    %23 = tpu.matmul %21, %22, %cst_7 {dimension_numbers = #tpu.dot_dimension_numbers<[1], [1], [0], [0], [0, 0, 1, 0], [], []>} : vector<32x256xbf16>, vector<128x256xbf16>, vector<32x128xf32> -> vector<32x128xf32>
    %c0_8 = arith.constant 0 : index
    %c0_9 = arith.constant 0 : index
    %24 = arith.index_cast %4 : i32 to index
    %25 = vector.load %arg2[%c0_8, %c0_9, %24] : memref<1x32x256xf32, #tpu.memory_space<vmem>>, vector<1x32x128xf32>
    %26 = vector.shape_cast %25 : vector<1x32x128xf32> to vector<32x128xf32>
    %c0_10 = arith.constant 0 : index
    %c0_11 = arith.constant 0 : index
    %27 = vector.load %arg5[%c0_10, %c0_11] : memref<1x1xf32, #tpu.memory_space<vmem>>, vector<1x1xf32>
    %28 = vector.extract %27[0, 0] : f32 from vector<1x1xf32>
    %29 = vector.broadcast %28 : f32 to vector<32x128xf32>
    %30 = arith.mulf %29, %23 : vector<32x128xf32>
    %31 = arith.addf %30, %26 : vector<32x128xf32>
    %c0_12 = arith.constant 0 : index
    %c0_13 = arith.constant 0 : index
    %c0_14 = arith.constant 0 : index
    %32 = vector.load %arg6[%c0_12, %c0_13, %c0_14] : memref<1x32x128xf32, #tpu.memory_space<vmem>>, vector<1x32x128xf32>
    %33 = vector.shape_cast %32 : vector<1x32x128xf32> to vector<32x128xf32>
    %34 = vector.shape_cast %31 : vector<32x128xf32> to vector<1x32x128xf32>
    tpu.vector_store %arg6[%c0_12, %c0_13, %c0_14], %34 {strides = array<i32>} : memref<1x32x128xf32, #tpu.memory_space<vmem>>, vector<1x32x128xf32>,
    %c0_15 = arith.constant 0 : index
    %c0_16 = arith.constant 0 : index
    %c0_17 = arith.constant 0 : index
    %35 = vector.load %arg7[%c0_15, %c0_16, %c0_17] : memref<1x128x256xf32, #tpu.memory_space<vmem>>, vector<1x128x256xf32>
    %36 = vector.shape_cast %35 : vector<1x128x256xf32> to vector<128x256xf32>
    %37 = vector.shape_cast %20 : vector<128x256xf32> to vector<1x128x256xf32>
    tpu.vector_store %arg7[%c0_15, %c0_16, %c0_17], %37 {strides = array<i32>} : memref<1x128x256xf32, #tpu.memory_space<vmem>>, vector<1x128x256xf32>,
    return
  }
  func.func @transform_0(%arg0: i32, %arg1: i32) -> (i32, i32, i32) {
    %c0_i32 = arith.constant 0 : i32
    %c0_i32_0 = arith.constant 0 : i32
    %c0_i32_1 = arith.constant 0 : i32
    return %arg0, %c0_i32, %c0_i32_0 : i32, i32, i32
  }
  func.func @transform_1(%arg0: i32, %arg1: i32) -> (i32, i32) {
    %c0_i32 = arith.constant 0 : i32
    %c0_i32_0 = arith.constant 0 : i32
    %c0_i32_1 = arith.constant 0 : i32
    return %c0_i32, %c0_i32_0 : i32, i32
  }
  func.func @transform_2(%arg0: i32, %arg1: i32) -> (i32, i32) {
    %c0_i32 = arith.constant 0 : i32
    %c0_i32_0 = arith.constant 0 : i32
    %c0_i32_1 = arith.constant 0 : i32
    return %c0_i32, %c0_i32_0 : i32, i32
  }
  func.func @transform_3(%arg0: i32, %arg1: i32) -> (i32, i32) {
    %c0_i32 = arith.constant 0 : i32
    %c0_i32_0 = arith.constant 0 : i32
    %c0_i32_1 = arith.constant 0 : i32
    return %c0_i32, %c0_i32_0 : i32, i32
  }
  func.func @transform_4(%arg0: i32, %arg1: i32) -> (i32, i32, i32) {
    %c0_i32 = arith.constant 0 : i32
    %c0_i32_0 = arith.constant 0 : i32
    return %arg0, %c0_i32, %arg1 : i32, i32, i32
  }
  func.func @transform_5(%arg0: i32, %arg1: i32) -> (i32, i32, i32) {
    %c0_i32 = arith.constant 0 : i32
    %c0_i32_0 = arith.constant 0 : i32
    return %arg0, %arg1, %c0_i32 : i32, i32, i32
  }
}

</mosaic_0001>

<bundles_post_ra>
// kernel: tpu_custom_call.1
= control target key start
LH: loop header
LB: loop body
LE: loop exit
PB: predicated region body
PF: predicated region fallthrough
CT: control target
= control target key end

     0   :  { %s2161_s0 = inlined_call_operand.vmem [shape: f32[2,32,256], index: 0, kind: input, shape index: {}]   ;;  %s2162_s1 = inlined_call_operand.vmem [shape: f32[64,32], index: 1, kind: input, shape index: {}]   ;;  %s2163_s2 = inlined_call_operand.vmem [shape: f32[64,1], index: 2, kind: input, shape index: {}]   ;;  %s2164_s3 = inlined_call_operand.<no memory space> [shape: f32[1,1], index: 3, kind: input, shape index: {}]   ;;  %s2165_s4 = inlined_call_operand.hbm [shape: f32[2,32,256], index: 4, kind: output, shape index: {0}]   ;;  %s2166_s5 = inlined_call_operand.hbm [shape: f32[2,256,256], index: 5, kind: output, shape index: {1}]  }
   0x1   :  { %2168 = sst [smem:[#allocation12_spill]] %s2161_s0  ;;  %v11_v0 = vstv %s2164_s3 }
   0x2   :  { %2169 = sst [smem:[#allocation13_spill]] %s2162_s1  ;;  %12 = vst [vmem:[#allocation5] sm:$0x1] %v11_v0 }
   0x3   :  { %2170 = sst [smem:[#allocation14_spill]] %s2163_s2 }
   0x4   :  { %13 = vsyncpa [#allocation7], 0 }
   0x5   :  { %15 = vsyncpa [#allocation7 + $0x1], 0 }
   0x6   :  { %16 = vsyncpa [#allocation9], 0 }
   0x7   :  { %18 = vsyncpa [#allocation9 + $0x1], 0  ;;  %s1601_s20 = smov 0   ;;  %s1603_s21 = smov 0  }
   0x8   :  { %s1605_s22 = smov 0   ;;  %s1607_s23 = smov 0  }
   0x9   :  { %s1609_s24 = smov 0   ;;  %s1611_s25 = smov 0  }
   0xa   :  { %s1613_s26 = smov 0   ;;  %s1615_s3 = smov 0  }
   0xb LB: > { %s1178_s27 = sadd.s32 4294967295, %s1557_s3   ;;  %s1179_s28 = sadd.s32 4294967294, %s1557_s3   ;;  %s1557_s3 = sphi %s1615_s3, %s24_s3   ;;  %s1553_s26 = sphi %s1613_s26, %s2183_s26   ;;  %s1549_s25 = sphi %s1611_s25, %s2182_s25   ;;  %s1545_s24 = sphi %s1609_s24, %s2181_s24   ;;  %s1541_s23 = sphi %s1607_s23, %s2180_s23   ;;  %s1537_s22 = sphi %s1605_s22, %s2179_s22   ;;  %s1533_s21 = sphi %s1603_s21, %s2178_s21   ;;  %s1529_s20 = sphi %s1601_s20, %s2177_s20  }
   0xc   : > { %s33_s29 = sadd.s32 1, %s1549_s25  ;;  %s36_s30 = sadd.s32 1, %s1553_s26 }
   0xd   : > { %p34_p0 = scmp.ge.s32.totalorder %s33_s29, 2  ;;  %p144_p1 = scmp.ne.s32.totalorder %s1537_s22, %s1533_s21 }
   0xe   : > { %p145_p2 = scmp.eq.s32.totalorder %s1178_s27, 3  ;;  %p150_p5 = scmp.ne.s32.totalorder %s1533_s21, %s1529_s20 }
   0xf   : > { %s2185_s29 = smov (%p34_p0, %s33_s29), 0  ;;  %s2187_s30 = smov (!%p34_p0, %s36_s30), %s1553_s26 }
  0x10   : > { %s130_s6 = ssub.s32 %s1549_s25, %s2185_s29  ;;  %p1652_p3 = por %p145_p2, %p144_p1 }
  0x11   : > { %p38_p4 = scmp.ge.s32.totalorder %s2187_s30, 2  ;;  %p151_p6 = scmp.eq.s32.totalorder %s1179_s28, 3 }
  0x12   : > { %p1182_p7 = scmp.ge.s32.totalorder %s1557_s3, 1  ;;  %p214_p9 = scmp.lt.s32.totalorder %s1557_s3, 5 }
  0x13   : > { %s2189_s30 = smov (%p38_p4, %s2187_s30), 0  ;;  %p1661_p8 = por %p151_p6, %p150_p5 }
  0x14   : > { %s129_s9 = ssub.s32 %s1553_s26, %s2189_s30  ;;  %s134_s10 = sadd.s32 1, %s1537_s22 }
  0x15   : > { %s131_s11 = sor.u32 %s130_s6, %s129_s9  ;;  %p215_p10 = pnand %p1182_p7, %p214_p9 }
  0x16   : > { %p132_p11 = scmp.eq.s32.totalorder %s131_s11, 0  ;;  %s1673_s13 = sand.u32 (!%p215_p10), 1, %s1533_s21  }
  0x17   : > { %218 = sbr.rel (%p215_p10) target bundleno = 1248 (0x4e0), region = 36  ;;  %p247_p12 = scmp.lt.s32.totalorder (!%p215_p10), %s1545_s24, 1 }
  0x18   : > { %s1670_s12 = scalar_select %p132_p11, %s1537_s22, %s134_s10  }
  0x19   : > { %s1183_s14 = sshll.u32 (!%p215_p10), %s1673_s13, 5  ;;  %s1184_s15 = sshll.u32 (!%p215_p10), %s1673_s13, 8 }
  0x1a   : > { %s2173_s0 = sld [smem:[#allocation12_spill]] (!%p215_p10)  ;;  %s1684_s28 = scalar_lea.vmem (!%p215_p10), [#allocation6], %s1183_s14 }
  0x1b   : > { %s1686_s6 = scalar_lea.vmem (!%p215_p10), [#allocation8], %s1184_s15  ;;  %p1187_p13 = scmp.ne.s32.totalorder (!%p215_p10), %s1541_s23, 0 }
  0x1e   : > { %s248_s16 = scalar_select %p247_p12, %s1545_s24, 1 }
  0x1f   : > { %257 = sbr.rel (%p1187_p13) target bundleno = 275 (0x113), region = 40  ;;  %v1559_v8 = vmov (!%p1187_p13), 0.0   ;;  %v1560_v13 = vmov (!%p1187_p13), 0   ;;  %s2174_s2 = sld [smem:[#allocation14_spill]] (!%p1187_p13)  ;;  %vm322_vm0 = vcmask (!%p1187_p13), 261120  }
  0x20   : > { %s1217_s17 = sshll.u32 %s248_s16, 6  ;;  %411 = vmatprep.mubr.f32.mxu0 (!%p1187_p13), %v1559_v8  ;;  %435 = vmatprep.mubr.f32.mxu1 (!%p1187_p13), %v1559_v8  ;;  %s2175_s1 = sld [smem:[#allocation13_spill]] (!%p1187_p13) }
  0x21   : > { %s1682_s27 = scalar_lea.vmem %s2173_s0, %s1217_s17  ;;  %1333 = vset.pattern.permute.xlu0 (!%p1187_p13), %v1560_v13  ;;  %1334 = vset.pattern.permute.xlu1 (!%p1187_p13), %v1560_v13 }
  0x22   : > { %v267_v1 = vld [vmem:[%s1682_s27 + $0x8] sm:$0xff] (!%p1187_p13)  ;;  %v269_v2 = vld [vmem:[%s1682_s27 + $0x18] sm:$0xff] (!%p1187_p13)  ;;  %v266_v3 = vld [vmem:[%s1682_s27] sm:$0xff] (!%p1187_p13) }
  0x23   : > { %v1219_v4 = vpack.c.bf16 (!%p1187_p13), %v269_v2, %v267_v1  ;;  %v268_v5 = vld [vmem:[%s1682_s27 + $0x10] sm:$0xff] (!%p1187_p13)  ;;  %v271_v6 = vld [vmem:[%s1682_s27 + $0x28] sm:$0xff] (!%p1187_p13)  ;;  %v273_v7 = vld [vmem:[%s1682_s27 + $0x38] sm:$0xff] (!%p1187_p13) }
  0x24   : > { %v1221_v9 = vpack.c.bf16 (!%p1187_p13), %v268_v5, %v266_v3  ;;  %v1223_v10 = vpack.c.bf16 (!%p1187_p13), %v273_v7, %v271_v6  ;;  %v270_v11 = vld [vmem:[%s1682_s27 + $0x20] sm:$0xff] (!%p1187_p13)  ;;  %v272_v12 = vld [vmem:[%s1682_s27 + $0x30] sm:$0xff] (!%p1187_p13) }
  0x25   : > { %1220 = vmatprep.subr.bf16.mxu0 (!%p1187_p13), %v1219_v4  ;;  %1227 = vmatprep.subr.bf16.mxu1 (!%p1187_p13), %v1219_v4  ;;  %v1225_v14 = vpack.c.bf16 (!%p1187_p13), %v272_v12, %v270_v11  ;;  %v276_v15 = vld [vmem:[%s2174_s2 + $0x10] sm:$0xff] (!%p1187_p13)  ;;  %v278_v16 = vld [vmem:[%s2174_s2 + $0x20] sm:$0xff] (!%p1187_p13)  ;;  %v277_v17 = vld [vmem:[%s2174_s2 + $0x18] sm:$0xff] (!%p1187_p13) }
  0x26   : > { %1222 = vmatpush1.bf16.msra.mxu0 %v1221_v9  ;;  %1229 = vmatpush1.bf16.msra.mxu1 %v1221_v9  ;;  %v279_v18 = vld [vmem:[%s2174_s2 + $0x28] sm:$0xff]  ;;  %v258_v19 = vld [vmem:[%s2175_s1] sm:$0xff]  ;;  %v280_v21 = vld [vmem:[%s2174_s2 + $0x30] sm:$0xff] }
  0x27   : > { %1224 = vmatprep.subr.bf16.mxu0 %v1223_v10  ;;  %1228 = vmatprep.subr.bf16.mxu1 %v1223_v10  ;;  %v262_v20 = vld [vmem:[%s2175_s1 + $0x20] sm:$0xff]  ;;  %v281_v22 = vld [vmem:[%s2174_s2 + $0x38] sm:$0xff]  ;;  %v259_v23 = vld [vmem:[%s2175_s1 + $0x8] sm:$0xff] }
  0x28   : > { %294 = vperm.xlu0 %1333, %v276_v15   ;;  %304 = vperm.xlu1 %1334, %v278_v16   ;;  %v263_v24 = vld [vmem:[%s2175_s1 + $0x28] sm:$0xff]  ;;  %v274_v25 = vld [vmem:[%s2174_s2] sm:$0xff]  ;;  %v260_v27 = vld [vmem:[%s2175_s1 + $0x10] sm:$0xff] }
  0x29   : > { %v275_v26 = vld [vmem:[%s2174_s2 + $0x8] sm:$0xff]  ;;  %v264_v28 = vld [vmem:[%s2175_s1 + $0x30] sm:$0xff]  ;;  %v261_v29 = vld [vmem:[%s2175_s1 + $0x18] sm:$0xff] }
  0x2a   : > { %1226 = vmatpush1.bf16.msra.mxu0 %v1225_v14  ;;  %1230 = vmatpush1.bf16.msra.mxu1 %v1225_v14  ;;  %v265_v30 = vld [vmem:[%s2175_s1 + $0x38] sm:$0xff] }
  0x2c   : > { %299 = vperm.xlu0 %1333, %v277_v17   ;;  %309 = vperm.xlu1 %1334, %v279_v18  }
  0x2d   : > { %1188 = vmatmul.mubr.msk.f32.vlgmr.msra.gmra.mrb[0].mxu0 %vm322_vm0, %v258_v19  ;;  %1192 = vmatmul.mubr.msk.f32.vlgmr.msra.gmra.mrb[0].mxu1 %vm322_vm0, %v262_v20 }
  0x2e   : > { %417 = vmatprep.mubr.f32.mxu0 %v1559_v8  ;;  %441 = vmatprep.mubr.f32.mxu1 %v1559_v8 }
  0x30   : > { %314 = vperm.xlu0 %1333, %v280_v21   ;;  %319 = vperm.xlu1 %1334, %v281_v22  }
  0x31   : > { %1189 = vmatmul.mubr.msk.f32.gmra.mrb[2].mxu0 %vm322_vm0, %v259_v23  ;;  %1193 = vmatmul.mubr.msk.f32.gmra.mrb[2].mxu1 %vm322_vm0, %v263_v24 }
  0x32   : > { %423 = vmatprep.mubr.f32.mxu0 %v1559_v8  ;;  %447 = vmatprep.mubr.f32.mxu1 %v1559_v8 }
  0x34   : > { %284 = vperm.xlu0 %1333, %v274_v25   ;;  %289 = vperm.xlu1 %1334, %v275_v26  }
  0x35   : > { %1190 = vmatmul.mubr.msk.f32.gmra.mrb[4].mxu0 %vm322_vm0, %v260_v27  ;;  %1194 = vmatmul.mubr.msk.f32.gmra.mrb[4].mxu1 %vm322_vm0, %v264_v28 }
  0x36   : > { %429 = vmatprep.mubr.f32.mxu0 %v1559_v8  ;;  %453 = vmatprep.mubr.f32.mxu1 %v1559_v8 }
  0x39   : > { %1191 = vmatmul.mubr.msk.f32.gmra.mrb[6].mxu0 %vm322_vm0, %v261_v29  ;;  %1195 = vmatmul.mubr.msk.f32.gmra.mrb[6].mxu1 %vm322_vm0, %v265_v30 }
  0xa7   : > { %v295_v31 = vpop.permute.xlu0 %294  ;;  %v305_v32 = vpop.permute.xlu1 %304 }
  0xab   : > { %v300_v33 = vpop.permute.xlu0 %299  ;;  %v310_v34 = vpop.permute.xlu1 %309 }
  0xaf   : > { %v315_v35 = vpop.permute.xlu0 %314  ;;  %v320_v36 = vpop.permute.xlu1 %319 }
  0xb3   : > { %v285_v37 = vpop.permute.xlu0 %284  ;;  %v290_v44 = vpop.permute.xlu1 %289 }
 0x100   : > { %v413_v38 = vpop.f32.mrb[0].mxu0  ;;  %v437_v39 = vpop.f32.mrb[0].mxu1 }
 0x101   : > { %v414_v40 = vadd.f32 %v413_v38, %v285_v37  ;;  %v415_v41 = vpop.f32.mrb[1].mxu0  ;;  %v439_v42 = vpop.f32.mrb[1].mxu1  ;;  %v438_v47 = vadd.f32 %v437_v39, %v305_v32 }
 0x102   : > { %v416_v43 = vadd.f32 %v415_v41, %v285_v37  ;;  %v440_v52 = vadd.f32 %v439_v42, %v305_v32 }
 0x103   : > { %460 = vst [vmem:[#allocation2] sm:$0xff] %v414_v40 }
 0x104   : > { %461 = vst [vmem:[#allocation2 + $0x8] sm:$0xff] %v416_v43  ;;  %v419_v45 = vpop.f32.mrb[2].mxu0  ;;  %v443_v46 = vpop.f32.mrb[2].mxu1 }
 0x105   : > { %v420_v48 = vadd.f32 %v419_v45, %v290_v44  ;;  %v444_v49 = vadd.f32 %v443_v46, %v310_v34  ;;  %v421_v50 = vpop.f32.mrb[3].mxu0  ;;  %v445_v51 = vpop.f32.mrb[3].mxu1 }
 0x106   : > { %v422_v53 = vadd.f32 %v421_v50, %v290_v44  ;;  %v446_v54 = vadd.f32 %v445_v51, %v310_v34 }
 0x107   : > { %462 = vst [vmem:[#allocation2 + $0x10] sm:$0xff] %v420_v48  ;;  %v468_v55 = vpack.c.bf16 %v444_v49, %v438_v47 }
 0x108   : > { %463 = vst [vmem:[#allocation2 + $0x18] sm:$0xff] %v422_v53  ;;  %v469_v56 = vpack.c.bf16 %v446_v54, %v440_v52  ;;  %v425_v57 = vpop.f32.mrb[4].mxu0  ;;  %v449_v58 = vpop.f32.mrb[4].mxu1 }
 0x109   : > { %472 = vst [vmem:[#allocation4] sm:$0xff] %v468_v55  ;;  %v427_v59 = vpop.f32.mrb[5].mxu0  ;;  %v451_v60 = vpop.f32.mrb[5].mxu1  ;;  %v426_v63 = vadd.f32 %v425_v57, %v295_v31  ;;  %v450_v0 = vadd.f32 %v449_v58, %v315_v35 }
 0x10a   : > { %473 = vst [vmem:[#allocation4 + $0x8] sm:$0xff] %v469_v56  ;;  %v428_v5 = vadd.f32 %v427_v59, %v295_v31  ;;  %v452_v6 = vadd.f32 %v451_v60, %v315_v35 }
 0x10c   : > { %v431_v61 = vpop.f32.mrb[6].mxu0  ;;  %v455_v62 = vpop.f32.mrb[6].mxu1 }
 0x10d   : > { %v432_v1 = vadd.f32 %v431_v61, %v300_v33  ;;  %v456_v2 = vadd.f32 %v455_v62, %v320_v36  ;;  %v433_v3 = vpop.f32.mrb[7].mxu0  ;;  %v457_v4 = vpop.f32.mrb[7].mxu1 }
 0x10e   : > { %v434_v7 = vadd.f32 %v433_v3, %v300_v33  ;;  %v458_v8 = vadd.f32 %v457_v4, %v320_v36 }
 0x10f   : > { %v464_v9 = vpack.c.bf16 %v432_v1, %v426_v63  ;;  %v470_v10 = vpack.c.bf16 %v456_v2, %v450_v0 }
 0x110   : > { %v465_v11 = vpack.c.bf16 %v434_v7, %v428_v5  ;;  %v471_v12 = vpack.c.bf16 %v458_v8, %v452_v6 }
 0x111   : > { %466 = vst [vmem:[#allocation3] sm:$0xff] %v464_v9  ;;  %474 = vst [vmem:[#allocation4 + $0x10] sm:$0xff] %v470_v10 }
 0x112   : > { %467 = vst [vmem:[#allocation3 + $0x8] sm:$0xff] %v465_v11  ;;  %475 = vst [vmem:[#allocation4 + $0x18] sm:$0xff] %v471_v12 }
 0x113 PF: > { %s1196_s11 = sshll.u32 %s1541_s23, 7  ;;  %v1561_v17 = vmov 0   ;;  %vm525_vm1 = vcmask 130048   ;;  %s1218_s0 = sshll.u32 %s1541_s23, 5 }
 0x114   : > { %s1754_s14 = sshra.s32 %s1196_s11, 7  ;;  %582 = vmatprep.mubr.bf16.mxu0 %v1561_v17  ;;  %s1213_s17 = sshll.u32 %s1545_s24, 6 }
 0x115   : > { %s2167_s15 = sshll.u32 %s1754_s14, 3  ;;  %s1061_s18 = sadd.s32 %s1218_s0, %s1213_s17 }
 0x116   : > { %s480_s16 = scalar_lea.vmem [#allocation2], %s2167_s15  ;;  %s1214_s19 = sshll.u32 %s1061_s18, 7 }
 0x117   : > { %v481_v13 = vld [vmem:[%s480_s16] sm:$0xff]  ;;  %v482_v16 = vld [vmem:[%s480_s16 + $0x10] sm:$0xff]  ;;  %s1064_s9 = sshll.u32 %s1686_s6, 4  ;;  %s2061_s16 = scalar_lea.hbm %s2166_s5, %s1214_s19  ;;  %s2063_s9 = int_to_ptr.vmem [resolvable:$true] %s1064_s9 }
 0x118   : > { %483 = vxpose.xlu0.b32.start [1/2] (short) %v481_v13, 128  ;;  %v523_v15 = vld [vmem:[#allocation3] sm:$0xff]  ;;  %s1031_s15 = scalar_lea.sflag [#allocation9], %s1673_s13  ;;  %s1431_s1 = scalar_lea.vmem %s2063_s9, 4096 }
 0x119   : > { %v524_v14 = vld [vmem:[#allocation3 + $0x8] sm:$0xff]  ;;  %p1432_p0 = scmp.ne.s32.totalorder %s2063_s9, %s1431_s1  ;;  %s1562_s2 = smov [#allocation8]  }
 0x11a   : > { %550 = vmatprep.subr.bf16.mxu0 %v524_v14  ;;  %s1435_s0 = sshll.u32 %s1562_s2, 4  ;;  %s1436_s0 = int_to_ptr.vmem [resolvable:$false] %s1435_s0 }
 0x11b   : > { %551 = vmatpush1.bf16.msra.mxu0 %v523_v15  ;;  %p1433_p1 = pnand %p1432_p0, %p1652_p3  ;;  %p1438_p4 = scmp.lt.s32.totalorder %s2063_s9, %s1436_s0 }
 0x11c   : > { %484 = vxpose.xlu0.b32.end [2/2] (short) %v482_v16, 128 }
 0x11d   : > { %p1434_p2 = pneg %p1433_p1 }
 0x198   : > { %v499_v18 = vpop.trf.xlu0 }
 0x19c   : > { %v500_v19 = vpop.trf.xlu0 }
 0x19d   : > { %v515_v20 = vpack.c.bf16 %v500_v19, %v499_v18 }
 0x19f   : > { %1198 = vmatmul.mubr.msk.bf16.vlgmr.msra.gmra.mrb[0].mxu0 %vm525_vm1, %v515_v20 }
 0x1a0   : > { %v501_v21 = vpop.trf.xlu0  ;;  %592 = vmatprep.mubr.bf16.mxu0 %v1561_v17 }
 0x1a4   : > { %v502_v22 = vpop.trf.xlu0 }
 0x1a5   : > { %v516_v23 = vpack.c.bf16 %v502_v22, %v501_v21 }
 0x1a7   : > { %1199 = vmatmul.mubr.msk.bf16.gmra.mrb[4].mxu0 %vm525_vm1, %v516_v23 }
 0x1a8   : > { %v503_v24 = vpop.trf.xlu0  ;;  %602 = vmatprep.mubr.bf16.mxu0 %v1561_v17 }
 0x1ac   : > { %v504_v25 = vpop.trf.xlu0 }
 0x1ad   : > { %v517_v26 = vpack.c.bf16 %v504_v25, %v503_v24 }
 0x1af   : > { %1200 = vmatmul.mubr.msk.bf16.gmra.mrb[8].mxu0 %vm525_vm1, %v517_v26 }
 0x1b0   : > { %v505_v27 = vpop.trf.xlu0  ;;  %612 = vmatprep.mubr.bf16.mxu0 %v1561_v17 }
 0x1b4   : > { %v506_v28 = vpop.trf.xlu0 }
 0x1b5   : > { %v518_v29 = vpack.c.bf16 %v506_v28, %v505_v27 }
 0x1b7   : > { %1201 = vmatmul.mubr.msk.bf16.gmra.mrb[12].mxu0 %vm525_vm1, %v518_v29 }
 0x1b8   : > { %v507_v30 = vpop.trf.xlu0  ;;  %622 = vmatprep.mubr.bf16.mxu0 %v1561_v17 }
 0x1bc   : > { %v508_v31 = vpop.trf.xlu0 }
 0x1bd   : > { %v519_v32 = vpack.c.bf16 %v508_v31, %v507_v30 }
 0x1bf   : > { %1202 = vmatmul.mubr.msk.bf16.gmra.mrb[16].mxu0 %vm525_vm1, %v519_v32 }
 0x1c0   : > { %v509_v33 = vpop.trf.xlu0  ;;  %632 = vmatprep.mubr.bf16.mxu0 %v1561_v17 }
 0x1c4   : > { %v510_v34 = vpop.trf.xlu0 }
 0x1c5   : > { %v520_v35 = vpack.c.bf16 %v510_v34, %v509_v33 }
 0x1c7   : > { %1203 = vmatmul.mubr.msk.bf16.gmra.mrb[20].mxu0 %vm525_vm1, %v520_v35 }
 0x1c8   : > { %v511_v36 = vpop.trf.xlu0  ;;  %642 = vmatprep.mubr.bf16.mxu0 %v1561_v17 }
 0x1cc   : > { %v512_v37 = vpop.trf.xlu0 }
 0x1cd   : > { %v521_v38 = vpack.c.bf16 %v512_v37, %v511_v36 }
 0x1cf   : > { %1204 = vmatmul.mubr.msk.bf16.gmra.mrb[24].mxu0 %vm525_vm1, %v521_v38 }
 0x1d0   : > { %v513_v39 = vpop.trf.xlu0  ;;  %652 = vmatprep.mubr.bf16.mxu0 %v1561_v17 }
 0x1d4   : > { %v514_v40 = vpop.trf.xlu0 }
 0x1d5   : > { %v522_v41 = vpack.c.bf16 %v514_v40, %v513_v39 }
 0x1d7   : > { %1205 = vmatmul.mubr.msk.bf16.gmra.mrb[28].mxu0 %vm525_vm1, %v522_v41 }
 0x272   : > { %v1767_v42 = vpop.f32.mrb[0].mxu0 }
 0x273   : > { %v1769_v43 = vpop.f32.mrb[1].mxu0 }
 0x274   : > { %v1771_v44 = vpop.f32.mrb[2].mxu0  ;;  %v663_v45 = vmax.f32 %v1767_v42, %v1769_v43 }
 0x275   : > { %v1775_v46 = vpop.f32.mrb[3].mxu0 }
 0x276   : > { %664 = vmax.xlane.f32.xlu1 %v663_v45  ;;  %v666_v47 = vmax.f32 %v1771_v44, %v1775_v46 }
 0x27a   : > { %667 = vmax.xlane.f32.xlu1 %v666_v47  ;;  %v1779_v48 = vpop.f32.mrb[4].mxu0 }
 0x27b   : > { %v1781_v49 = vpop.f32.mrb[5].mxu0 }
 0x27c   : > { %v1783_v50 = vpop.f32.mrb[6].mxu0  ;;  %v669_v51 = vmax.f32 %v1779_v48, %v1781_v49 }
 0x27d   : > { %v1787_v52 = vpop.f32.mrb[7].mxu0 }
 0x27e   : > { %670 = vmax.xlane.f32.xlu0 %v669_v51  ;;  %v672_v53 = vmax.f32 %v1783_v50, %v1787_v52 }
 0x280   : > { %673 = vmax.xlane.f32.xlu1 %v672_v53 }
 0x282   : > { %v1791_v54 = vpop.f32.mrb[8].mxu0 }
 0x283   : > { %v1793_v55 = vpop.f32.mrb[9].mxu0 }
 0x284   : > { %v1795_v56 = vpop.f32.mrb[10].mxu0  ;;  %v675_v57 = vmax.f32 %v1791_v54, %v1793_v55 }
 0x285   : > { %v1799_v58 = vpop.f32.mrb[11].mxu0 }
 0x286   : > { %676 = vmax.xlane.f32.xlu1 %v675_v57  ;;  %v678_v59 = vmax.f32 %v1795_v56, %v1799_v58 }
 0x28a   : > { %679 = vmax.xlane.f32.xlu1 %v678_v59  ;;  %v1803_v60 = vpop.f32.mrb[12].mxu0 }
 0x28b   : > { %v1805_v61 = vpop.f32.mrb[13].mxu0 }
 0x28c   : > { %v1807_v62 = vpop.f32.mrb[14].mxu0  ;;  %v681_v63 = vmax.f32 %v1803_v60, %v1805_v61 }
 0x28d   : > { %v1811_v0 = vpop.f32.mrb[15].mxu0 }
 0x28e   : > { %682 = vmax.xlane.f32.xlu1 %v681_v63  ;;  %v684_v1 = vmax.f32 %v1807_v62, %v1811_v0 }
 0x292   : > { %685 = vmax.xlane.f32.xlu1 %v684_v1  ;;  %v1815_v2 = vpop.f32.mrb[16].mxu0 }
 0x293   : > { %v1817_v3 = vpop.f32.mrb[17].mxu0 }
 0x294   : > { %v1819_v4 = vpop.f32.mrb[18].mxu0  ;;  %v687_v5 = vmax.f32 %v1815_v2, %v1817_v3 }
 0x295   : > { %v1823_v6 = vpop.f32.mrb[19].mxu0 }
 0x296   : > { %688 = vmax.xlane.f32.xlu1 %v687_v5  ;;  %v690_v7 = vmax.f32 %v1819_v4, %v1823_v6 }
 0x29a   : > { %691 = vmax.xlane.f32.xlu1 %v690_v7  ;;  %v1827_v8 = vpop.f32.mrb[20].mxu0 }
 0x29b   : > { %v1829_v9 = vpop.f32.mrb[21].mxu0 }
 0x29c   : > { %v1831_v10 = vpop.f32.mrb[22].mxu0  ;;  %v693_v11 = vmax.f32 %v1827_v8, %v1829_v9 }
 0x29d   : > { %v1835_v12 = vpop.f32.mrb[23].mxu0 }
 0x29e   : > { %694 = vmax.xlane.f32.xlu1 %v693_v11  ;;  %v696_v13 = vmax.f32 %v1831_v10, %v1835_v12 }
 0x2a2   : > { %697 = vmax.xlane.f32.xlu1 %v696_v13  ;;  %v1839_v14 = vpop.f32.mrb[24].mxu0 }
 0x2a3   : > { %v1841_v15 = vpop.f32.mrb[25].mxu0 }
 0x2a4   : > { %v1843_v16 = vpop.f32.mrb[26].mxu0  ;;  %v699_v17 = vmax.f32 %v1839_v14, %v1841_v15 }
 0x2a5   : > { %v1847_v18 = vpop.f32.mrb[27].mxu0 }
 0x2a6   : > { %700 = vmax.xlane.f32.xlu1 %v699_v17  ;;  %v702_v19 = vmax.f32 %v1843_v16, %v1847_v18 }
 0x2aa   : > { %703 = vmax.xlane.f32.xlu1 %v702_v19  ;;  %v1851_v20 = vpop.f32.mrb[28].mxu0 }
 0x2ab   : > { %v1853_v21 = vpop.f32.mrb[29].mxu0 }
 0x2ac   : > { %v1855_v22 = vpop.f32.mrb[30].mxu0  ;;  %v705_v23 = vmax.f32 %v1851_v20, %v1853_v21 }
 0x2ad   : > { %v1859_v24 = vpop.f32.mrb[31].mxu0 }
 0x2ae   : > { %706 = vmax.xlane.f32.xlu1 %v705_v23  ;;  %v708_v25 = vmax.f32 %v1855_v22, %v1859_v24 }
 0x2b2   : > { %709 = vmax.xlane.f32.xlu1 %v708_v25 }
 0x303   : > { %v665_v26 = vpop.xlane.xlu1 %664 }
 0x304   : > { %v711_v27 = vsub.f32 %v1767_v42, %v665_v26  ;;  %v712_v28 = vsub.f32 %v1769_v43, %v665_v26 }
 0x306   : > { %v743_v29 = vmul.f32 1.442695, %v711_v27  ;;  %v745_v30 = vmul.f32 1.442695, %v712_v28 }
 0x307   : > { %v668_v31 = vpop.xlane.xlu1 %667 }
 0x308   : > { %1335 = vpow2.f32 %v743_v29  ;;  %v713_v32 = vsub.f32 %v1771_v44, %v668_v31  ;;  %v714_v33 = vsub.f32 %v1775_v46, %v668_v31 }
 0x309   : > { %1337 = vpow2.f32 %v745_v30 }
 0x30a   : > { %v747_v34 = vmul.f32 1.442695, %v713_v32  ;;  %v749_v35 = vmul.f32 1.442695, %v714_v33 }
 0x30b   : > { %v671_v36 = vpop.xlane.xlu0 %670 }
 0x30c   : > { %1339 = vpow2.f32 %v747_v34  ;;  %v715_v37 = vsub.f32 %v1779_v48, %v671_v36  ;;  %v716_v38 = vsub.f32 %v1781_v49, %v671_v36 }
 0x30d   : > { %1341 = vpow2.f32 %v749_v35  ;;  %v674_v39 = vpop.xlane.xlu1 %673 }
 0x30e   : > { %v751_v40 = vmul.f32 1.442695, %v715_v37  ;;  %v753_v41 = vmul.f32 1.442695, %v716_v38  ;;  %v717_v42 = vsub.f32 %v1783_v50, %v674_v39  ;;  %v718_v43 = vsub.f32 %v1787_v52, %v674_v39 }
 0x310   : > { %1343 = vpow2.f32 %v751_v40  ;;  %v755_v44 = vmul.f32 1.442695, %v717_v42  ;;  %v757_v45 = vmul.f32 1.442695, %v718_v43 }
 0x311   : > { %1345 = vpow2.f32 %v753_v41 }
 0x312   : > { %v1871_v46 = vpop.eup %1335  ;;  %1347 = vpow2.f32 %v755_v44 }
 0x313   : > { %v1873_v47 = vpop.eup %1337  ;;  %1349 = vpow2.f32 %v757_v45  ;;  %v677_v48 = vpop.xlane.xlu1 %676 }
 0x314   : > { %v719_v49 = vsub.f32 %v1791_v54, %v677_v48  ;;  %v720_v51 = vsub.f32 %v1793_v55, %v677_v48  ;;  %v807_v50 = vadd.f32 %v1873_v47, %v1871_v46 }
 0x316   : > { %v1879_v53 = vpop.eup %1339  ;;  %v759_v52 = vmul.f32 1.442695, %v719_v49  ;;  %v761_v57 = vmul.f32 1.442695, %v720_v51  ;;  %808 = vadd.xlane.f32.xlu1 %v807_v50 }
 0x317   : > { %v1881_v59 = vpop.eup %1341  ;;  %v680_v63 = vpop.xlane.xlu1 %679 }
 0x318   : > { %1351 = vpow2.f32 %v759_v52  ;;  %v721_v1 = vsub.f32 %v1795_v56, %v680_v63  ;;  %v722_v5 = vsub.f32 %v1799_v58, %v680_v63  ;;  %v810_v54 = vadd.f32 %v1881_v59, %v1879_v53 }
 0x319   : > { %1353 = vpow2.f32 %v761_v57 }
 0x31a   : > { %v1887_v55 = vpop.eup %1343  ;;  %v763_v7 = vmul.f32 1.442695, %v721_v1  ;;  %v765_v11 = vmul.f32 1.442695, %v722_v5  ;;  %811 = vadd.xlane.f32.xlu1 %v810_v54 }
 0x31b   : > { %v1889_v13 = vpop.eup %1345  ;;  %v683_v17 = vpop.xlane.xlu1 %682 }
 0x31c   : > { %v1891_v19 = vpop.eup %1347  ;;  %1355 = vpow2.f32 %v763_v7  ;;  %v723_v23 = vsub.f32 %v1803_v60, %v683_v17  ;;  %v724_v56 = vsub.f32 %v1805_v61, %v683_v17  ;;  %v813_v58 = vadd.f32 %v1889_v13, %v1887_v55 }
 0x31d   : > { %v1897_v25 = vpop.eup %1349  ;;  %1357 = vpow2.f32 %v765_v11 }
 0x31e   : > { %v767_v26 = vmul.f32 1.442695, %v723_v23  ;;  %v769_v27 = vmul.f32 1.442695, %v724_v56  ;;  %814 = vadd.xlane.f32.xlu1 %v813_v58  ;;  %v816_v60 = vadd.f32 %v1897_v25, %v1891_v19 }
 0x31f   : > { %v686_v28 = vpop.xlane.xlu1 %685 }
 0x320   : > { %1359 = vpow2.f32 %v767_v26  ;;  %v725_v29 = vsub.f32 %v1807_v62, %v686_v28  ;;  %v726_v30 = vsub.f32 %v1811_v0, %v686_v28 }
 0x321   : > { %1361 = vpow2.f32 %v769_v27 }
 0x322   : > { %v1903_v61 = vpop.eup %1351  ;;  %v771_v31 = vmul.f32 1.442695, %v725_v29  ;;  %v773_v32 = vmul.f32 1.442695, %v726_v30  ;;  %817 = vadd.xlane.f32.xlu1 %v816_v60 }
 0x323   : > { %v1905_v33 = vpop.eup %1353  ;;  %v689_v34 = vpop.xlane.xlu1 %688 }
 0x324   : > { %1363 = vpow2.f32 %v771_v31  ;;  %v727_v35 = vsub.f32 %v1815_v2, %v689_v34  ;;  %v728_v36 = vsub.f32 %v1817_v3, %v689_v34  ;;  %v819_v62 = vadd.f32 %v1905_v33, %v1903_v61 }
 0x325   : > { %1365 = vpow2.f32 %v773_v32 }
 0x326   : > { %v1911_v0 = vpop.eup %1355  ;;  %v775_v37 = vmul.f32 1.442695, %v727_v35  ;;  %v777_v38 = vmul.f32 1.442695, %v728_v36  ;;  %820 = vadd.xlane.f32.xlu1 %v819_v62 }
 0x327   : > { %v1913_v39 = vpop.eup %1357  ;;  %v692_v40 = vpop.xlane.xlu1 %691 }
 0x328   : > { %1367 = vpow2.f32 %v775_v37  ;;  %v729_v41 = vsub.f32 %v1819_v4, %v692_v40  ;;  %v730_v42 = vsub.f32 %v1823_v6, %v692_v40  ;;  %v822_v2 = vadd.f32 %v1913_v39, %v1911_v0 }
 0x329   : > { %1369 = vpow2.f32 %v777_v38 }
 0x32a   : > { %v1919_v3 = vpop.eup %1359  ;;  %v779_v43 = vmul.f32 1.442695, %v729_v41  ;;  %v781_v44 = vmul.f32 1.442695, %v730_v42  ;;  %823 = vadd.xlane.f32.xlu1 %v822_v2 }
 0x32b   : > { %v1921_v45 = vpop.eup %1361  ;;  %v695_v48 = vpop.xlane.xlu1 %694 }
 0x32c   : > { %1371 = vpow2.f32 %v779_v43  ;;  %v731_v49 = vsub.f32 %v1827_v8, %v695_v48  ;;  %v732_v51 = vsub.f32 %v1829_v9, %v695_v48  ;;  %v825_v4 = vadd.f32 %v1921_v45, %v1919_v3 }
 0x32d   : > { %1373 = vpow2.f32 %v781_v44 }
 0x32e   : > { %v1927_v6 = vpop.eup %1363  ;;  %v783_v50 = vmul.f32 1.442695, %v731_v49  ;;  %v785_v52 = vmul.f32 1.442695, %v732_v51  ;;  %826 = vadd.xlane.f32.xlu1 %v825_v4 }
 0x32f   : > { %v1929_v57 = vpop.eup %1365  ;;  %v698_v63 = vpop.xlane.xlu1 %697 }
 0x330   : > { %1375 = vpow2.f32 %v783_v50  ;;  %v733_v1 = vsub.f32 %v1831_v10, %v698_v63  ;;  %v734_v5 = vsub.f32 %v1835_v12, %v698_v63  ;;  %v828_v8 = vadd.f32 %v1929_v57, %v1927_v6 }
 0x331   : > { %1377 = vpow2.f32 %v785_v52 }
 0x332   : > { %v1935_v9 = vpop.eup %1367  ;;  %v787_v54 = vmul.f32 1.442695, %v733_v1  ;;  %v789_v7 = vmul.f32 1.442695, %v734_v5  ;;  %829 = vadd.xlane.f32.xlu1 %v828_v8  ;;  %v904_v5 = vld [vmem:[#allocation4 + $0x8] sm:$0xff]  ;;  %v906_v8 = vld [vmem:[#allocation4 + $0x18] sm:$0xff] }
 0x333   : > { %v1937_v11 = vpop.eup %1369  ;;  %v701_v17 = vpop.xlane.xlu1 %700  ;;  %955 = vmatprep.mubr.bf16.mxu0 %v904_v5  ;;  %963 = vmatprep.mubr.bf16.mxu1 %v906_v8 }
 0x334   : > { %1379 = vpow2.f32 %v787_v54  ;;  %v735_v23 = vsub.f32 %v1839_v14, %v701_v17  ;;  %v736_v56 = vsub.f32 %v1841_v15, %v701_v17  ;;  %v831_v10 = vadd.f32 %v1937_v11, %v1935_v9  ;;  %v978_v54 = vld [vmem:[#allocation5] sm:$0x1] }
 0x335   : > { %1381 = vpow2.f32 %v789_v7  ;;  %1247 = vpush %v978_v54 }
 0x336   : > { %v1943_v12 = vpop.eup %1371  ;;  %v791_v58 = vmul.f32 1.442695, %v735_v23  ;;  %v793_v26 = vmul.f32 1.442695, %v736_v56  ;;  %832 = vadd.xlane.f32.xlu1 %v831_v10 }
 0x337   : > { %v1945_v27 = vpop.eup %1373  ;;  %v704_v28 = vpop.xlane.xlu1 %703 }
 0x338   : > { %1383 = vpow2.f32 %v791_v58  ;;  %v737_v29 = vsub.f32 %v1843_v16, %v704_v28  ;;  %v738_v30 = vsub.f32 %v1847_v18, %v704_v28  ;;  %v834_v14 = vadd.f32 %v1945_v27, %v1943_v12 }
 0x339   : > { %1385 = vpow2.f32 %v793_v26 }
 0x33a   : > { %v1951_v15 = vpop.eup %1375  ;;  %v795_v60 = vmul.f32 1.442695, %v737_v29  ;;  %v797_v31 = vmul.f32 1.442695, %v738_v30  ;;  %835 = vadd.xlane.f32.xlu1 %v834_v14 }
 0x33b   : > { %v1953_v32 = vpop.eup %1377  ;;  %v707_v34 = vpop.xlane.xlu1 %706 }
 0x33c   : > { %1387 = vpow2.f32 %v795_v60  ;;  %v739_v35 = vsub.f32 %v1851_v20, %v707_v34  ;;  %v740_v36 = vsub.f32 %v1853_v21, %v707_v34  ;;  %v837_v16 = vadd.f32 %v1953_v32, %v1951_v15 }
 0x33d   : > { %1389 = vpow2.f32 %v797_v31 }
 0x33e   : > { %v1959_v18 = vpop.eup %1379  ;;  %v799_v62 = vmul.f32 1.442695, %v739_v35  ;;  %v801_v37 = vmul.f32 1.442695, %v740_v36  ;;  %838 = vadd.xlane.f32.xlu1 %v837_v16 }
 0x33f   : > { %v1961_v38 = vpop.eup %1381  ;;  %v710_v40 = vpop.xlane.xlu1 %709 }
 0x340   : > { %1391 = vpow2.f32 %v799_v62  ;;  %v741_v41 = vsub.f32 %v1855_v22, %v710_v40  ;;  %v742_v42 = vsub.f32 %v1859_v24, %v710_v40  ;;  %v840_v20 = vadd.f32 %v1961_v38, %v1959_v18 }
 0x341   : > { %1393 = vpow2.f32 %v801_v37 }
 0x342   : > { %v1967_v21 = vpop.eup %1383  ;;  %v803_v2 = vmul.f32 1.442695, %v741_v41  ;;  %v805_v43 = vmul.f32 1.442695, %v742_v42  ;;  %841 = vadd.xlane.f32.xlu1 %v840_v20 }
 0x343   : > { %v1969_v44 = vpop.eup %1385 }
 0x344   : > { %1395 = vpow2.f32 %v803_v2  ;;  %v843_v48 = vadd.f32 %v1969_v44, %v1967_v21 }
 0x345   : > { %1397 = vpow2.f32 %v805_v43 }
 0x346   : > { %v1973_v49 = vpop.eup %1387  ;;  %844 = vadd.xlane.f32.xlu1 %v843_v48 }
 0x347   : > { %v1975_v22 = vpop.eup %1389 }
 0x348   : > { %v846_v24 = vadd.f32 %v1975_v22, %v1973_v49 }
 0x34a   : > { %v1979_v51 = vpop.eup %1391  ;;  %847 = vadd.xlane.f32.xlu0 %v846_v24 }
 0x34b   : > { %v1981_v4 = vpop.eup %1393 }
 0x34c   : > { %v849_v50 = vadd.f32 %v1981_v4, %v1979_v51 }
 0x34e   : > { %v1985_v52 = vpop.eup %1395  ;;  %850 = vadd.xlane.f32.xlu1 %v849_v50 }
 0x34f   : > { %v1987_v63 = vpop.eup %1397 }
 0x350   : > { %v852_v1 = vadd.f32 %v1987_v63, %v1985_v52 }
 0x352   : > { %853 = vadd.xlane.f32.xlu0 %v852_v1 }
 0x3a3   : > { %v809_v7 = vpop.xlane.xlu1 %808 }
 0x3a4   : > { %1399 = vrcp.f32 %v809_v7 }
 0x3a7   : > { %v812_v17 = vpop.xlane.xlu1 %811 }
 0x3a8   : > { %1401 = vrcp.f32 %v812_v17 }
 0x3ab   : > { %v815_v23 = vpop.xlane.xlu1 %814 }
 0x3ac   : > { %1403 = vrcp.f32 %v815_v23 }
 0x3ae   : > { %v1400_v56 = vpop.eup %1399 }
 0x3af   : > { %v818_v10 = vpop.xlane.xlu1 %817  ;;  %v872_v58 = vmul.f32 %v1400_v56, %v1873_v47  ;;  %v871_v26 = vmul.f32 %v1400_v56, %v1871_v46 }
 0x3b0   : > { %1405 = vrcp.f32 %v818_v10 }
 0x3b1   : > { %994 = vst [vmem:[%s1686_s6 + $0x8] sm:$0xff] %v872_v58  ;;  %993 = vst [vmem:[%s1686_s6] sm:$0xff] %v871_v26 }
 0x3b2   : > { %v1402_v28 = vpop.eup %1401 }
 0x3b3   : > { %v821_v29 = vpop.xlane.xlu1 %820  ;;  %v874_v30 = vmul.f32 %v1402_v28, %v1881_v59  ;;  %v873_v14 = vmul.f32 %v1402_v28, %v1879_v53 }
 0x3b4   : > { %1407 = vrcp.f32 %v821_v29 }
 0x3b5   : > { %v908_v60 = vpack.c.bf16 %v874_v30, %v872_v58  ;;  %996 = vst [vmem:[%s1686_s6 + $0x18] sm:$0xff] %v874_v30  ;;  %v907_v31 = vpack.c.bf16 %v873_v14, %v871_v26  ;;  %995 = vst [vmem:[%s1686_s6 + $0x10] sm:$0xff] %v873_v14 }
 0x3b6   : > { %v1404_v34 = vpop.eup %1403 }
 0x3b7   : > { %923 = vmatprep.subr.bf16.mxu0 %v908_v60  ;;  %1231 = vmatprep.subr.bf16.mxu1 %v908_v60  ;;  %v824_v46 = vpop.xlane.xlu1 %823  ;;  %v876_v47 = vmul.f32 %v1404_v34, %v1889_v13  ;;  %v875_v35 = vmul.f32 %v1404_v34, %v1887_v55 }
 0x3b8   : > { %1409 = vrcp.f32 %v824_v46  ;;  %924 = vmatpush1.bf16.xpose.msra.mxu0 %v907_v31  ;;  %1239 = vmatpush1.bf16.xpose.msra.mxu1 %v907_v31 }
 0x3b9   : > { %998 = vst [vmem:[%s1686_s6 + $0x28] sm:$0xff] %v876_v47  ;;  %997 = vst [vmem:[%s1686_s6 + $0x20] sm:$0xff] %v875_v35 }
 0x3ba   : > { %v1406_v53 = vpop.eup %1405 }
 0x3bb   : > { %v827_v59 = vpop.xlane.xlu1 %826  ;;  %v878_v36 = vmul.f32 %v1406_v53, %v1897_v25  ;;  %v877_v16 = vmul.f32 %v1406_v53, %v1891_v19 }
 0x3bc   : > { %1411 = vrcp.f32 %v827_v59 }
 0x3bd   : > { %v910_v62 = vpack.c.bf16 %v878_v36, %v876_v47  ;;  %1000 = vst [vmem:[%s1686_s6 + $0x38] sm:$0xff] %v878_v36  ;;  %v909_v37 = vpack.c.bf16 %v877_v16, %v875_v35  ;;  %999 = vst [vmem:[%s1686_s6 + $0x30] sm:$0xff] %v877_v16 }
 0x3be   : > { %v1408_v13 = vpop.eup %1407 }
 0x3bf   : > { %925 = vmatprep.subr.bf16.mxu0 %v910_v62  ;;  %1232 = vmatprep.subr.bf16.mxu1 %v910_v62  ;;  %v830_v55 = vpop.xlane.xlu1 %829  ;;  %v880_v40 = vmul.f32 %v1408_v13, %v1905_v33  ;;  %v879_v41 = vmul.f32 %v1408_v13, %v1903_v61 }
 0x3c0   : > { %1413 = vrcp.f32 %v830_v55  ;;  %926 = vmatpush1.bf16.xpose.msra.mxu0 %v909_v37  ;;  %1240 = vmatpush1.bf16.xpose.msra.mxu1 %v909_v37 }
 0x3c1   : > { %1002 = vst [vmem:[%s1686_s6 + $0x48] sm:$0xff] %v880_v40  ;;  %1001 = vst [vmem:[%s1686_s6 + $0x40] sm:$0xff] %v879_v41 }
 0x3c2   : > { %v1410_v19 = vpop.eup %1409 }
 0x3c3   : > { %v833_v25 = vpop.xlane.xlu1 %832  ;;  %v882_v42 = vmul.f32 %v1410_v19, %v1913_v39  ;;  %v881_v20 = vmul.f32 %v1410_v19, %v1911_v0 }
 0x3c4   : > { %1415 = vrcp.f32 %v833_v25 }
 0x3c5   : > { %v912_v2 = vpack.c.bf16 %v882_v42, %v880_v40  ;;  %1004 = vst [vmem:[%s1686_s6 + $0x58] sm:$0xff] %v882_v42  ;;  %v911_v43 = vpack.c.bf16 %v881_v20, %v879_v41  ;;  %1003 = vst [vmem:[%s1686_s6 + $0x50] sm:$0xff] %v881_v20 }
 0x3c6   : > { %v1412_v33 = vpop.eup %1411 }
 0x3c7   : > { %927 = vmatprep.subr.bf16.mxu0 %v912_v2  ;;  %1233 = vmatprep.subr.bf16.mxu1 %v912_v2  ;;  %v836_v61 = vpop.xlane.xlu1 %835  ;;  %v884_v48 = vmul.f32 %v1412_v33, %v1921_v45  ;;  %v883_v24 = vmul.f32 %v1412_v33, %v1919_v3 }
 0x3c8   : > { %1417 = vrcp.f32 %v836_v61  ;;  %928 = vmatpush1.bf16.xpose.msra.mxu0 %v911_v43  ;;  %1241 = vmatpush1.bf16.xpose.msra.mxu1 %v911_v43 }
 0x3c9   : > { %1006 = vst [vmem:[%s1686_s6 + $0x68] sm:$0xff] %v884_v48  ;;  %1005 = vst [vmem:[%s1686_s6 + $0x60] sm:$0xff] %v883_v24 }
 0x3ca   : > { %v1414_v0 = vpop.eup %1413 }
 0x3cb   : > { %v839_v39 = vpop.xlane.xlu1 %838  ;;  %v886_v50 = vmul.f32 %v1414_v0, %v1929_v57  ;;  %v885_v1 = vmul.f32 %v1414_v0, %v1927_v6 }
 0x3cc   : > { %1419 = vrcp.f32 %v839_v39 }
 0x3cd   : > { %v914_v5 = vpack.c.bf16 %v886_v50, %v884_v48  ;;  %1008 = vst [vmem:[%s1686_s6 + $0x78] sm:$0xff] %v886_v50  ;;  %v913_v8 = vpack.c.bf16 %v885_v1, %v883_v24  ;;  %1007 = vst [vmem:[%s1686_s6 + $0x70] sm:$0xff] %v885_v1 }
 0x3ce   : > { %v1416_v45 = vpop.eup %1415 }
 0x3cf   : > { %929 = vmatprep.subr.bf16.mxu0 %v914_v5  ;;  %1234 = vmatprep.subr.bf16.mxu1 %v914_v5  ;;  %v842_v3 = vpop.xlane.xlu1 %841  ;;  %v888_v54 = vmul.f32 %v1416_v45, %v1937_v11  ;;  %v887_v7 = vmul.f32 %v1416_v45, %v1935_v9 }
 0x3d0   : > { %1421 = vrcp.f32 %v842_v3  ;;  %930 = vmatpush1.bf16.xpose.msra.mxu0 %v913_v8  ;;  %1242 = vmatpush1.bf16.xpose.msra.mxu1 %v913_v8 }
 0x3d1   : > { %1010 = vst [vmem:[%s1686_s6 + $0x88] sm:$0xff] %v888_v54  ;;  %1009 = vst [vmem:[%s1686_s6 + $0x80] sm:$0xff] %v887_v7 }
 0x3d2   : > { %v1418_v6 = vpop.eup %1417 }
 0x3d3   : > { %v845_v57 = vpop.xlane.xlu1 %844  ;;  %v890_v17 = vmul.f32 %v1418_v6, %v1945_v27  ;;  %v889_v23 = vmul.f32 %v1418_v6, %v1943_v12 }
 0x3d4   : > { %1423 = vrcp.f32 %v845_v57 }
 0x3d5   : > { %v916_v56 = vpack.c.bf16 %v890_v17, %v888_v54  ;;  %1012 = vst [vmem:[%s1686_s6 + $0x98] sm:$0xff] %v890_v17  ;;  %v915_v10 = vpack.c.bf16 %v889_v23, %v887_v7  ;;  %1011 = vst [vmem:[%s1686_s6 + $0x90] sm:$0xff] %v889_v23 }
 0x3d6   : > { %v1420_v11 = vpop.eup %1419 }
 0x3d7   : > { %931 = vmatprep.subr.bf16.mxu0 %v916_v56  ;;  %1235 = vmatprep.subr.bf16.mxu1 %v916_v56  ;;  %v848_v9 = vpop.xlane.xlu0 %847  ;;  %v892_v58 = vmul.f32 %v1420_v11, %v1953_v32  ;;  %v891_v26 = vmul.f32 %v1420_v11, %v1951_v15 }
 0x3d8   : > { %1425 = vrcp.f32 %v848_v9  ;;  %932 = vmatpush1.bf16.xpose.msra.mxu0 %v915_v10  ;;  %1243 = vmatpush1.bf16.xpose.msra.mxu1 %v915_v10 }
 0x3d9   : > { %1014 = vst [vmem:[%s1686_s6 + $0xa8] sm:$0xff] %v892_v58  ;;  %1013 = vst [vmem:[%s1686_s6 + $0xa0] sm:$0xff] %v891_v26 }
 0x3da   : > { %v1422_v12 = vpop.eup %1421 }
 0x3db   : > { %v851_v27 = vpop.xlane.xlu1 %850  ;;  %v894_v28 = vmul.f32 %v1422_v12, %v1961_v38  ;;  %v893_v29 = vmul.f32 %v1422_v12, %v1959_v18 }
 0x3dc   : > { %1427 = vrcp.f32 %v851_v27 }
 0x3dd   : > { %v918_v30 = vpack.c.bf16 %v894_v28, %v892_v58  ;;  %1016 = vst [vmem:[%s1686_s6 + $0xb8] sm:$0xff] %v894_v28  ;;  %v917_v14 = vpack.c.bf16 %v893_v29, %v891_v26  ;;  %1015 = vst [vmem:[%s1686_s6 + $0xb0] sm:$0xff] %v893_v29 }
 0x3de   : > { %v1424_v15 = vpop.eup %1423 }
 0x3df   : > { %933 = vmatprep.subr.bf16.mxu0 %v918_v30  ;;  %1236 = vmatprep.subr.bf16.mxu1 %v918_v30  ;;  %v854_v32 = vpop.xlane.xlu0 %853  ;;  %v896_v60 = vmul.f32 %v1424_v15, %v1969_v44  ;;  %v895_v31 = vmul.f32 %v1424_v15, %v1967_v21 }
 0x3e0   : > { %1429 = vrcp.f32 %v854_v32  ;;  %934 = vmatpush1.bf16.xpose.msra.mxu0 %v917_v14  ;;  %1244 = vmatpush1.bf16.xpose.msra.mxu1 %v917_v14 }
 0x3e1   : > { %1018 = vst [vmem:[%s1686_s6 + $0xc8] sm:$0xff] %v896_v60  ;;  %1017 = vst [vmem:[%s1686_s6 + $0xc0] sm:$0xff] %v895_v31 }
 0x3e2   : > { %v1426_v18 = vpop.eup %1425 }
 0x3e3   : > { %v898_v38 = vmul.f32 %v1426_v18, %v1975_v22  ;;  %v897_v34 = vmul.f32 %v1426_v18, %v1973_v49 }
 0x3e5   : > { %v920_v46 = vpack.c.bf16 %v898_v38, %v896_v60  ;;  %1020 = vst [vmem:[%s1686_s6 + $0xd8] sm:$0xff] %v898_v38  ;;  %v919_v47 = vpack.c.bf16 %v897_v34, %v895_v31  ;;  %1019 = vst [vmem:[%s1686_s6 + $0xd0] sm:$0xff] %v897_v34 }
 0x3e6   : > { %v1428_v44 = vpop.eup %1427 }
 0x3e7   : > { %935 = vmatprep.subr.bf16.mxu0 %v920_v46  ;;  %1237 = vmatprep.subr.bf16.mxu1 %v920_v46  ;;  %v900_v21 = vmul.f32 %v1428_v44, %v1981_v4  ;;  %v899_v35 = vmul.f32 %v1428_v44, %v1979_v51  ;;  %v903_v51 = vld [vmem:[#allocation4] sm:$0xff]  ;;  %v905_v4 = vld [vmem:[#allocation4 + $0x10] sm:$0xff] }
 0x3e8   : > { %936 = vmatpush1.bf16.xpose.msra.mxu0 %v919_v47  ;;  %1245 = vmatpush1.bf16.xpose.msra.mxu1 %v919_v47 }
 0x3e9   : > { %1022 = vst [vmem:[%s1686_s6 + $0xe8] sm:$0xff] %v900_v21  ;;  %1021 = vst [vmem:[%s1686_s6 + $0xe0] sm:$0xff] %v899_v35 }
 0x3ea   : > { %v1430_v22 = vpop.eup %1429 }
 0x3eb   : > { %v902_v49 = vmul.f32 %v1430_v22, %v1987_v63  ;;  %v901_v53 = vmul.f32 %v1430_v22, %v1985_v52 }
 0x3ed   : > { %v922_v59 = vpack.c.bf16 %v902_v49, %v900_v21  ;;  %1024 = vst [vmem:[%s1686_s6 + $0xf8] sm:$0xff] %v902_v49  ;;  %v921_v36 = vpack.c.bf16 %v901_v53, %v899_v35  ;;  %1023 = vst [vmem:[%s1686_s6 + $0xf0] sm:$0xff] %v901_v53  ;;  %s1437_s6 = scalar_lea.vmem %s1436_s0, 8192 }
 0x3ee   : > { %p1439_p5 = scmp.lt.s32.totalorder %s1437_s6, %s1431_s1 }
 0x3ef   : > { %937 = vmatprep.subr.bf16.mxu0 %v922_v59  ;;  %1238 = vmatprep.subr.bf16.mxu1 %v922_v59 }
 0x3f0   : > { %938 = vmatpush1.bf16.xpose.msra.mxu0 %v921_v36  ;;  %1246 = vmatpush1.bf16.xpose.msra.mxu1 %v921_v36  ;;  %p1440_p6 = por %p1439_p5, %p1438_p4 }
 0x3f2   : > { %p1441_p7 = pnand %p1440_p6, %p1434_p2 }
 0x3f7   : > { %956 = vmatmul.mubr.bf16.vlgmr.msra.gmra.mrb[32].mxu0 %v903_v51  ;;  %964 = vmatmul.mubr.bf16.vlgmr.msra.gmra.mrb[0].mxu1 %v905_v4 }
 0x3f8   : > { %1444 = shalt.err (!%p1441_p7)
}
 0x3f9   : > { %s1445_s17 = scalar_lea.hbm %s2061_s16, 4096  ;;  %s1449_s2 = scalar_lea.hbm %s2166_s5, 16384 }
 0x3fa   : > { %p1446_p9 = scmp.ne.s32.totalorder %s2061_s16, %s1445_s17  ;;  %p1450_p12 = scmp.lt.u32.totalorder %s2061_s16, %s2166_s5 }
 0x3fb   : > { %p1451_p13 = scmp.lt.u32.totalorder %s1449_s2, %s1445_s17  ;;  %p1453_p1 = scmp.lt.u32.totalorder %s1445_s17, %s2061_s16 }
 0x3fc   : > { %p1447_p10 = pnand %p1446_p9, %p1652_p3 }
 0x3fd   : > { %p1452_p0 = por %p1451_p13, %p1450_p12 }
 0x3fe   : > { %p1448_p11 = pneg %p1447_p10 }
 0x3ff   : > { %p1454_p2 = por %p1453_p1, %p1452_p0 }
 0x401   : > { %p1455_p4 = pnand %p1454_p2, %p1448_p11 }
 0x403   : > { %1458 = shalt.err (!%p1455_p4)
}
 0x404   : > { %s1563_s1 = smov 256   ;;  %s1564_s0 = smov 16  }
 0x405   : > { %1250 = dma.vmem_to_hbm [thread:$0]  (%p1652_p3), %s2063_s9, 4096, %s2061_s16, %s1031_s15, %s1563_s1, %s1563_s1, %s1564_s0  }
 0x406   : > { %s1248_s6 = spop %1247  ;;  %s1209_s17 = sshll.u32 %s1545_s24, 3 }
 0x407   : > { %s2176_s18 = sshll.u32 %s1754_s14, 3  ;;  %v980_v52 = vstv %s1248_s6  ;;  %s1042_s2 = sadd.s32 %s1541_s23, %s1209_s17 }
 0x408   : > { %s973_s19 = scalar_lea.vmem %s1682_s27, %s2176_s18  ;;  %s1210_s10 = sshll.u32 %s1042_s2, 7 }
 0x409   : > { %v974_v62 = vld [vmem:[%s973_s19] sm:$0xff]  ;;  %s1045_s11 = sshll.u32 %s1684_s28, 4  ;;  %v975_v25 = vld [vmem:[%s973_s19 + $0x10] sm:$0xff]  ;;  %s2100_s27 = scalar_lea.hbm %s2165_s4, %s1210_s10  ;;  %s2102_s11 = int_to_ptr.vmem [resolvable:$true] %s1045_s11 }
 0x40a   : > { %v976_v37 = vld [vmem:[%s973_s19 + $0x20] sm:$0xff]  ;;  %v977_v20 = vld [vmem:[%s973_s19 + $0x30] sm:$0xff]  ;;  %s1026_s14 = scalar_lea.sflag [#allocation7], %s1673_s13  ;;  %s1459_s15 = scalar_lea.vmem %s2102_s11, 512 }
 0x40b   : > { %p1460_p5 = scmp.ne.s32.totalorder %s2102_s11, %s1459_s15  ;;  %s1565_s9 = smov [#allocation6]  }
 0x40c   : > { %s1463_s16 = sshll.u32 %s1565_s9, 4  ;;  %s1464_s16 = int_to_ptr.vmem [resolvable:$false] %s1463_s16 }
 0x40d   : > { %p1461_p6 = pnand %p1460_p5, %p1652_p3  ;;  %s1465_s0 = scalar_lea.vmem %s1464_s16, 1024 }
 0x40e   : > { %p1466_p9 = scmp.lt.s32.totalorder %s2102_s11, %s1464_s16  ;;  %p1467_p10 = scmp.lt.s32.totalorder %s1465_s0, %s1459_s15 }
 0x40f   : > { %p1462_p7 = pneg %p1461_p6 }
 0x410   : > { %p1468_p11 = por %p1467_p10, %p1466_p9 }
 0x412   : > { %p1469_p12 = pnand %p1468_p11, %p1462_p7 }
 0x4ca   : > { %v957_v63 = vpop.f32.mrb[32].mxu0  ;;  %v965_v16 = vpop.f32.mrb[0].mxu1 }
 0x4cb   : > { %v981_v13 = vmul.f32 %v980_v52, %v957_v63  ;;  %v983_v55 = vmul.f32 %v980_v52, %v965_v16  ;;  %v959_v40 = vpop.f32.mrb[33].mxu0  ;;  %v967_v41 = vpop.f32.mrb[1].mxu1 }
 0x4cc   : > { %v960_v19 = vpop.f32.mrb[34].mxu0  ;;  %v968_v42 = vpop.f32.mrb[2].mxu1 }
 0x4cd   : > { %v985_v2 = vadd.f32 %v981_v13, %v974_v62  ;;  %v987_v43 = vadd.f32 %v983_v55, %v976_v37  ;;  %v982_v33 = vmul.f32 %v980_v52, %v960_v19  ;;  %v984_v61 = vmul.f32 %v980_v52, %v968_v42  ;;  %v962_v48 = vpop.f32.mrb[35].mxu0  ;;  %v970_v24 = vpop.f32.mrb[3].mxu1 }
 0x4cf   : > { %989 = vst [vmem:[%s1684_s28] sm:$0xff] %v985_v2  ;;  %991 = vst [vmem:[%s1684_s28 + $0x10] sm:$0xff] %v987_v43  ;;  %v986_v0 = vadd.f32 %v982_v33, %v975_v25  ;;  %v988_v39 = vadd.f32 %v984_v61, %v977_v20 }
 0x4d1   : > { %990 = vst [vmem:[%s1684_s28 + $0x8] sm:$0xff] %v986_v0  ;;  %992 = vst [vmem:[%s1684_s28 + $0x18] sm:$0xff] %v988_v39 }
 0x4d2   : > { %1472 = shalt.err (!%p1469_p12)
}
 0x4d3   : > { %s1473_s28 = scalar_lea.hbm %s2100_s27, 512  ;;  %s1477_s18 = scalar_lea.hbm %s2165_s4, 2048 }
 0x4d4   : > { %p1474_p13 = scmp.ne.s32.totalorder %s2100_s27, %s1473_s28  ;;  %p1478_p2 = scmp.lt.u32.totalorder %s2100_s27, %s2165_s4 }
 0x4d5   : > { %p1479_p4 = scmp.lt.u32.totalorder %s1477_s18, %s1473_s28  ;;  %p1481_p6 = scmp.lt.u32.totalorder %s1473_s28, %s2100_s27 }
 0x4d6   : > { %p1475_p0 = pnand %p1474_p13, %p1652_p3 }
 0x4d7   : > { %p1480_p5 = por %p1479_p4, %p1478_p2 }
 0x4d8   : > { %p1476_p1 = pneg %p1475_p0 }
 0x4d9   : > { %p1482_p7 = por %p1481_p6, %p1480_p5 }
 0x4db   : > { %p1483_p9 = pnand %p1482_p7, %p1476_p1 }
 0x4dd   : > { %1486 = shalt.err (!%p1483_p9)
}
 0x4de   : > { %s1566_s10 = smov 128   ;;  %s1567_s23 = smov 8  }
 0x4df   : > { %1249 = dma.vmem_to_hbm [thread:$0]  (%p1652_p3), %s2102_s11, 512, %s2100_s27, %s1026_s14, %s1566_s10, %s1563_s1, %s1567_s23  }
 0x4e0 PF: > { %p1260_p10 = scmp.ge.s32.totalorder %s1557_s3, 2  ;;  %s1079_s24 = sand.u32 1, %s1529_s20  }
 0x4e1   : > { %s1080_s15 = scalar_lea.sflag [#allocation7], %s1079_s24 }
 0x4e2   : > { %p1254_p11 = pnand %p1260_p10, %p1661_p8 }
 0x4e4   : > { %1520 = dma.done.wait (!%p1254_p11), %s1080_s15, 512  }
 0x4e5   : > { %1522 = vsyncadd (!%p1254_p11), %s1080_s15, 4294966784  ;;  %s1089_s9 = scalar_lea.sflag [#allocation9], %s1079_s24 }
 0x4e6   : > { %1524 = dma.done.wait (!%p1254_p11), %s1089_s9, 4096  }
 0x4e7   : > { %1526 = vsyncadd (!%p1254_p11), %s1089_s9, 4294963200  ;;  %s24_s3 = sadd.s32 1, %s1557_s3   ;;  %s2177_s20 = smov %s1533_s21 }
 0x4e8   : > { %p21_p12 = scmp.ge.s32.totalorder %s24_s3, 6   ;;  %s2178_s21 = smov %s1537_s22 }
 0x4e9   : > { %s2179_s22 = smov %s1670_s12  ;;  %s2180_s23 = smov %s1549_s25 }
 0x4ea   : > { %s2181_s24 = smov %s1553_s26  ;;  %s2182_s25 = smov %s2185_s29 }
 0x4eb   : > { %s2183_s26 = smov %s2189_s30  ;;  %23 = sbr.rel (!%p21_p12) target bundleno = 11 (0xb), region = 94 }
 0x4f2   :  { %1094 = vsyncpa [#allocation7], 1 }
 0x4f3   :  { %1096 = vsyncpa [#allocation7 + $0x1], 1 }
 0x4f4   :  { %1097 = vsyncpa [#allocation9], 1 }
 0x4f5   :  { %1099 = vsyncpa [#allocation9 + $0x1], 1 }

</bundles_post_ra>
